<compile_context>
chip_gen: v6e
topology: v6e:2x2x1
jax: 0.10.0
libtpu: 0.0.40
codegen_flags: <defaults>
</compile_context>

<pallas_src>
import math

import jax
import jax.numpy as jnp
from jax.experimental import pallas as pl
from jax.experimental.pallas import tpu as pltpu

# FC(40, 50, 50, 50, 50, 50, 24)
SIZES = (40, 50, 50, 50, 50, 50, 24)
NUM_LAYERS = len(SIZES) - 1  # 6 linear layers

K_PAD = 128  # padded contraction width (lane-dense, uniform across layers)
N_PAD = 128  # padded output width (lane-dense)


def _round_up(n, m):
    return ((n + m - 1) // m) * m


def mlp_kernel(x_ref, w_ref, b_ref, out_ref):
    """x_ref: (TM, 128); w_ref: (6, 128, 128); b_ref: (6, 1, 128); out: (TM, 128)."""
    h = x_ref[...].astype(jnp.float32)  # (TM, 128), lanes >= 40 are zero
    for layer in range(NUM_LAYERS):  # unrolled: 6 iterations
        w = w_ref[layer]  # (128, 128), padded rows/cols are zero
        b = b_ref[layer]  # (1, 128)
        h = jnp.dot(h, w, preferred_element_type=jnp.float32) + b
        if layer < NUM_LAYERS - 1:
            h = jnp.maximum(h, 0.0)  # ReLU on hidden layers only
    out_ref[...] = h.astype(out_ref.dtype)


def pack_params(params):
    """Pack list of (W_(in,out), b_(1,out)) into zero-padded stacks."""
    w_pack = jnp.zeros((NUM_LAYERS, K_PAD, N_PAD), dtype=jnp.float32)
    b_pack = jnp.zeros((NUM_LAYERS, 1, N_PAD), dtype=jnp.float32)
    for i, (w, b) in enumerate(params):
        fin, fout = w.shape
        w_pack = w_pack.at[i, :fin, :fout].set(w.astype(jnp.float32))
        b_pack = b_pack.at[i, 0, :fout].set(b.reshape(-1).astype(jnp.float32))
    return w_pack, b_pack


def net_forward(x, params, *, block_m=256):
    """x: (batch, 40) float32.  params: list of (W_(in,out), b_(1,out))."""
    batch = x.shape[0]

    # Batch tile: multiple of 8 sublanes, capped at block_m (256 feeds the MXU).
    tm = min(block_m, _round_up(batch, 8))
    batch_pad = _round_up(batch, tm)
    grid_m = batch_pad // tm

    # Lane-dense zero-padded input (extra rows and lanes >= 40 are zero).
    x_pad = jnp.zeros((batch_pad, K_PAD), dtype=jnp.float32)
    x_pad = x_pad.at[:batch, : SIZES[0]].set(x.astype(jnp.float32))

    w_pack, b_pack = pack_params(params)

    # Advisory cost estimate (true flops/bytes, not padded).
    flops = 2 * batch * sum(SIZES[i] * SIZES[i + 1] for i in range(NUM_LAYERS))
    bytes_accessed = 4 * (
        batch * SIZES[0]
        + sum(SIZES[i] * SIZES[i + 1] + SIZES[i + 1] for i in range(NUM_LAYERS))
        + batch * SIZES[-1]
    )

    out_pad = pl.pallas_call(
        mlp_kernel,
        out_shape=jax.ShapeDtypeStruct((batch_pad, N_PAD), jnp.float32),
        grid=(grid_m,),
        in_specs=[
            # Batch-tiled input.
            pl.BlockSpec((tm, K_PAD), lambda i: (i, 0)),
            # Weight / bias stacks: constant index_map -> DMA'd once, resident.
            pl.BlockSpec((NUM_LAYERS, K_PAD, N_PAD), lambda i: (0, 0, 0)),
            pl.BlockSpec((NUM_LAYERS, 1, N_PAD), lambda i: (0, 0, 0)),
        ],
        out_specs=pl.BlockSpec((tm, N_PAD), lambda i: (i, 0)),
        compiler_params=pltpu.CompilerParams(
            # Batch axis is independent -> lets v7x's two TensorCores split it.
            dimension_semantics=("parallel",),
        ),
        cost_estimate=pl.CostEstimate(
            flops=flops, transcendentals=0, bytes_accessed=bytes_accessed
        ),
    )(x_pad, w_pack, b_pack)

    # Slice away batch / lane padding: real logits are the first 24 columns.
    return out_pad[:batch, : SIZES[-1]]


def init_params(key):
    """Deterministic Xavier-uniform weights, zero biases (mirrors weight_init)."""
    params = []
    for layer in range(NUM_LAYERS):
        fan_in, fan_out = SIZES[layer], SIZES[layer + 1]
        key, sub = jax.random.split(key)
        limit = math.sqrt(6.0 / (fan_in + fan_out))
        w = jax.random.uniform(
            sub, (fan_in, fan_out), minval=-limit, maxval=limit, dtype=jnp.float32
        )
        b = jnp.zeros((1, fan_out), dtype=jnp.float32)
        params.append((w, b))
    return params


def reference_forward(x, params):
    """Plain-JAX reference of the same MLP for a sanity check."""
    h = x
    for layer, (w, b) in enumerate(params):
        h = h @ w + b
        if layer < NUM_LAYERS - 1:
            h = jnp.maximum(h, 0.0)
    return h


if __name__ == "__main__":
    key = jax.random.PRNGKey(0)
    key, xkey = jax.random.split(key)

    batch = 8
    # Net.forward expects x of shape (batch_size, 40)
    x = jax.random.normal(xkey, (batch, SIZES[0]), dtype=jnp.float32)

    params = init_params(jax.random.PRNGKey(64))  # deterministic init

    out = net_forward(x, params)
    out = jax.block_until_ready(out)

    ref = reference_forward(x, params)
    assert out.shape == (batch, SIZES[-1]), out.shape
    assert jnp.allclose(out, ref, atol=1e-4, rtol=1e-4), "mismatch vs reference"

    print("KERNEL_OK")
</pallas_src>

<mosaic_0001>
module attributes {stable_mosaic.version = 11 : i64} {
  func.func @mlp_kernel(%arg0: i32, %arg1: memref<8x128xf32, #tpu.memory_space<vmem>>, %arg2: memref<6x128x128xf32, #tpu.memory_space<vmem>>, %arg3: memref<6x1x128xf32, #tpu.memory_space<vmem>>, %arg4: memref<8x128xf32, #tpu.memory_space<vmem>>) attributes {dimension_semantics = [#tpu.dimension_semantics<parallel>], iteration_bounds = array<i64: 1>, scalar_prefetch = 0 : i64, scratch_operands = 0 : i64, tpu.core_type = #tpu.core_type<tc>, window_params = [{transform_indices = @transform_0, window_bounds = array<i64: 8, 128>}, {pipeline_mode = #tpu.pipeline_mode<synchronous>, transform_indices = @transform_1, window_bounds = array<i64: 6, 128, 128>}, {pipeline_mode = #tpu.pipeline_mode<synchronous>, transform_indices = @transform_2, window_bounds = array<i64: 6, 1, 128>}, {transform_indices = @transform_3, window_bounds = array<i64: 8, 128>}]} {
    %c0 = arith.constant 0 : index
    %c0_0 = arith.constant 0 : index
    %0 = vector.load %arg1[%c0, %c0_0] : memref<8x128xf32, #tpu.memory_space<vmem>>, vector<8x128xf32>
    %c0_1 = arith.constant 0 : index
    %c0_2 = arith.constant 0 : index
    %c0_3 = arith.constant 0 : index
    %1 = vector.load %arg2[%c0_1, %c0_2, %c0_3] : memref<6x128x128xf32, #tpu.memory_space<vmem>>, vector<1x128x128xf32>
    %2 = vector.shape_cast %1 : vector<1x128x128xf32> to vector<128x128xf32>
    %c0_4 = arith.constant 0 : index
    %c0_5 = arith.constant 0 : index
    %c0_6 = arith.constant 0 : index
    %3 = vector.load %arg3[%c0_4, %c0_5, %c0_6] : memref<6x1x128xf32, #tpu.memory_space<vmem>>, vector<1x1x128xf32>
    %4 = vector.shape_cast %3 : vector<1x1x128xf32> to vector<1x128xf32>
    %cst = arith.constant dense<0.000000e+00> : vector<8x128xf32>
    %5 = tpu.matmul %0, %2, %cst {dimension_numbers = #tpu.dot_dimension_numbers<[1], [0], [0], [1], [0, 0, 1, 1], [], []>} : vector<8x128xf32>, vector<128x128xf32>, vector<8x128xf32> -> vector<8x128xf32>
    %6 = vector.broadcast %4 : vector<1x128xf32> to vector<8x128xf32>
    %7 = arith.addf %5, %6 : vector<8x128xf32>
    %cst_7 = arith.constant 0.000000e+00 : f32
    %8 = vector.broadcast %cst_7 : f32 to vector<8x128xf32>
    %9 = arith.maximumf %7, %8 : vector<8x128xf32>
    %c1 = arith.constant 1 : index
    %c0_8 = arith.constant 0 : index
    %c0_9 = arith.constant 0 : index
    %10 = vector.load %arg2[%c1, %c0_8, %c0_9] : memref<6x128x128xf32, #tpu.memory_space<vmem>>, vector<1x128x128xf32>
    %11 = vector.shape_cast %10 : vector<1x128x128xf32> to vector<128x128xf32>
    %c1_10 = arith.constant 1 : index
    %c0_11 = arith.constant 0 : index
    %c0_12 = arith.constant 0 : index
    %12 = vector.load %arg3[%c1_10, %c0_11, %c0_12] : memref<6x1x128xf32, #tpu.memory_space<vmem>>, vector<1x1x128xf32>
    %13 = vector.shape_cast %12 : vector<1x1x128xf32> to vector<1x128xf32>
    %cst_13 = arith.constant dense<0.000000e+00> : vector<8x128xf32>
    %14 = tpu.matmul %9, %11, %cst_13 {dimension_numbers = #tpu.dot_dimension_numbers<[1], [0], [0], [1], [0, 0, 1, 1], [], []>} : vector<8x128xf32>, vector<128x128xf32>, vector<8x128xf32> -> vector<8x128xf32>
    %15 = vector.broadcast %13 : vector<1x128xf32> to vector<8x128xf32>
    %16 = arith.addf %14, %15 : vector<8x128xf32>
    %cst_14 = arith.constant 0.000000e+00 : f32
    %17 = vector.broadcast %cst_14 : f32 to vector<8x128xf32>
    %18 = arith.maximumf %16, %17 : vector<8x128xf32>
    %c2 = arith.constant 2 : index
    %c0_15 = arith.constant 0 : index
    %c0_16 = arith.constant 0 : index
    %19 = vector.load %arg2[%c2, %c0_15, %c0_16] : memref<6x128x128xf32, #tpu.memory_space<vmem>>, vector<1x128x128xf32>
    %20 = vector.shape_cast %19 : vector<1x128x128xf32> to vector<128x128xf32>
    %c2_17 = arith.constant 2 : index
    %c0_18 = arith.constant 0 : index
    %c0_19 = arith.constant 0 : index
    %21 = vector.load %arg3[%c2_17, %c0_18, %c0_19] : memref<6x1x128xf32, #tpu.memory_space<vmem>>, vector<1x1x128xf32>
    %22 = vector.shape_cast %21 : vector<1x1x128xf32> to vector<1x128xf32>
    %cst_20 = arith.constant dense<0.000000e+00> : vector<8x128xf32>
    %23 = tpu.matmul %18, %20, %cst_20 {dimension_numbers = #tpu.dot_dimension_numbers<[1], [0], [0], [1], [0, 0, 1, 1], [], []>} : vector<8x128xf32>, vector<128x128xf32>, vector<8x128xf32> -> vector<8x128xf32>
    %24 = vector.broadcast %22 : vector<1x128xf32> to vector<8x128xf32>
    %25 = arith.addf %23, %24 : vector<8x128xf32>
    %cst_21 = arith.constant 0.000000e+00 : f32
    %26 = vector.broadcast %cst_21 : f32 to vector<8x128xf32>
    %27 = arith.maximumf %25, %26 : vector<8x128xf32>
    %c3 = arith.constant 3 : index
    %c0_22 = arith.constant 0 : index
    %c0_23 = arith.constant 0 : index
    %28 = vector.load %arg2[%c3, %c0_22, %c0_23] : memref<6x128x128xf32, #tpu.memory_space<vmem>>, vector<1x128x128xf32>
    %29 = vector.shape_cast %28 : vector<1x128x128xf32> to vector<128x128xf32>
    %c3_24 = arith.constant 3 : index
    %c0_25 = arith.constant 0 : index
    %c0_26 = arith.constant 0 : index
    %30 = vector.load %arg3[%c3_24, %c0_25, %c0_26] : memref<6x1x128xf32, #tpu.memory_space<vmem>>, vector<1x1x128xf32>
    %31 = vector.shape_cast %30 : vector<1x1x128xf32> to vector<1x128xf32>
    %cst_27 = arith.constant dense<0.000000e+00> : vector<8x128xf32>
    %32 = tpu.matmul %27, %29, %cst_27 {dimension_numbers = #tpu.dot_dimension_numbers<[1], [0], [0], [1], [0, 0, 1, 1], [], []>} : vector<8x128xf32>, vector<128x128xf32>, vector<8x128xf32> -> vector<8x128xf32>
    %33 = vector.broadcast %31 : vector<1x128xf32> to vector<8x128xf32>
    %34 = arith.addf %32, %33 : vector<8x128xf32>
    %cst_28 = arith.constant 0.000000e+00 : f32
    %35 = vector.broadcast %cst_28 : f32 to vector<8x128xf32>
    %36 = arith.maximumf %34, %35 : vector<8x128xf32>
    %c4 = arith.constant 4 : index
    %c0_29 = arith.constant 0 : index
    %c0_30 = arith.constant 0 : index
    %37 = vector.load %arg2[%c4, %c0_29, %c0_30] : memref<6x128x128xf32, #tpu.memory_space<vmem>>, vector<1x128x128xf32>
    %38 = vector.shape_cast %37 : vector<1x128x128xf32> to vector<128x128xf32>
    %c4_31 = arith.constant 4 : index
    %c0_32 = arith.constant 0 : index
    %c0_33 = arith.constant 0 : index
    %39 = vector.load %arg3[%c4_31, %c0_32, %c0_33] : memref<6x1x128xf32, #tpu.memory_space<vmem>>, vector<1x1x128xf32>
    %40 = vector.shape_cast %39 : vector<1x1x128xf32> to vector<1x128xf32>
    %cst_34 = arith.constant dense<0.000000e+00> : vector<8x128xf32>
    %41 = tpu.matmul %36, %38, %cst_34 {dimension_numbers = #tpu.dot_dimension_numbers<[1], [0], [0], [1], [0, 0, 1, 1], [], []>} : vector<8x128xf32>, vector<128x128xf32>, vector<8x128xf32> -> vector<8x128xf32>
    %42 = vector.broadcast %40 : vector<1x128xf32> to vector<8x128xf32>
    %43 = arith.addf %41, %42 : vector<8x128xf32>
    %cst_35 = arith.constant 0.000000e+00 : f32
    %44 = vector.broadcast %cst_35 : f32 to vector<8x128xf32>
    %45 = arith.maximumf %43, %44 : vector<8x128xf32>
    %c5 = arith.constant 5 : index
    %c0_36 = arith.constant 0 : index
    %c0_37 = arith.constant 0 : index
    %46 = vector.load %arg2[%c5, %c0_36, %c0_37] : memref<6x128x128xf32, #tpu.memory_space<vmem>>, vector<1x128x128xf32>
    %47 = vector.shape_cast %46 : vector<1x128x128xf32> to vector<128x128xf32>
    %c5_38 = arith.constant 5 : index
    %c0_39 = arith.constant 0 : index
    %c0_40 = arith.constant 0 : index
    %48 = vector.load %arg3[%c5_38, %c0_39, %c0_40] : memref<6x1x128xf32, #tpu.memory_space<vmem>>, vector<1x1x128xf32>
    %49 = vector.shape_cast %48 : vector<1x1x128xf32> to vector<1x128xf32>
    %cst_41 = arith.constant dense<0.000000e+00> : vector<8x128xf32>
    %50 = tpu.matmul %45, %47, %cst_41 {dimension_numbers = #tpu.dot_dimension_numbers<[1], [0], [0], [1], [0, 0, 1, 1], [], []>} : vector<8x128xf32>, vector<128x128xf32>, vector<8x128xf32> -> vector<8x128xf32>
    %51 = vector.broadcast %49 : vector<1x128xf32> to vector<8x128xf32>
    %52 = arith.addf %50, %51 : vector<8x128xf32>
    %c0_42 = arith.constant 0 : index
    %c0_43 = arith.constant 0 : index
    %53 = vector.load %arg4[%c0_42, %c0_43] : memref<8x128xf32, #tpu.memory_space<vmem>>, vector<8x128xf32>
    tpu.vector_store %arg4[%c0_42, %c0_43], %52 {strides = array<i32>} : memref<8x128xf32, #tpu.memory_space<vmem>>, vector<8x128xf32>,
    return
  }
  func.func @transform_0(%arg0: i32) -> (i32, i32) {
    %c0_i32 = arith.constant 0 : i32
    %c0_i32_0 = arith.constant 0 : i32
    return %arg0, %c0_i32 : i32, i32
  }
  func.func @transform_1(%arg0: i32) -> (i32, i32, i32) {
    %c0_i32 = arith.constant 0 : i32
    %c0_i32_0 = arith.constant 0 : i32
    %c0_i32_1 = arith.constant 0 : i32
    %c0_i32_2 = arith.constant 0 : i32
    return %c0_i32, %c0_i32_0, %c0_i32_1 : i32, i32, i32
  }
  func.func @transform_2(%arg0: i32) -> (i32, i32, i32) {
    %c0_i32 = arith.constant 0 : i32
    %c0_i32_0 = arith.constant 0 : i32
    %c0_i32_1 = arith.constant 0 : i32
    %c0_i32_2 = arith.constant 0 : i32
    return %c0_i32, %c0_i32_0, %c0_i32_1 : i32, i32, i32
  }
  func.func @transform_3(%arg0: i32) -> (i32, i32) {
    %c0_i32 = arith.constant 0 : i32
    %c0_i32_0 = arith.constant 0 : i32
    return %arg0, %c0_i32 : i32, i32
  }
}

</mosaic_0001>

<bundles_post_ra>
// kernel: tpu_custom_call.1
= control target key start
LH: loop header
LB: loop body
LE: loop exit
PB: predicated region body
PF: predicated region fallthrough
CT: control target
= control target key end

     0   :  { %8 = vsyncpa [#allocation3], 0  ;;  %s1209_s0 = inlined_call_operand.hbm [shape: f32[8,128], index: 0, kind: input, shape index: {}]   ;;  %s1210_s1 = inlined_call_operand.hbm [shape: f32[6,128,128], index: 1, kind: input, shape index: {}]   ;;  %s1211_s2 = inlined_call_operand.hbm [shape: f32[6,1,128], index: 2, kind: input, shape index: {}]   ;;  %s1212_s3 = inlined_call_operand.hbm [shape: f32[8,128], index: 3, kind: output, shape index: {}]  }
   0x1   :  { %9 = vsyncpa [#allocation6], 0 }
   0x2   :  { %10 = vsyncpa [#allocation4], 0  ;;  %s1059_s12 = smov [#allocation5]  }
   0x3   :  { %s26_s13 = sshll.u32 %s1059_s12, 4  ;;  %s27_s13 = int_to_ptr.vmem [resolvable:$true] %s26_s13 }
   0x4   :  { %s981_s14 = scalar_lea.vmem %s27_s13, 12288  ;;  %p986_p1 = scmp.lt.s32.totalorder %s27_s13, %s27_s13 }
   0x5   :  { %p982_p0 = scmp.ne.s32.totalorder %s27_s13, %s981_s14  ;;  %p987_p2 = scmp.lt.s32.totalorder %s981_s14, %s981_s14 }
   0x7   :  { %p988_p3 = por %p987_p2, %p986_p1 }
   0x9   :  { %p989_p4 = pnand %p988_p3, %p982_p0 }
   0xb   :  { %992 = shalt.err (!%p989_p4)
}
   0xc   :  { %s1060_s15 = smov 128   ;;  %s1061_s16 = smov 8  }
   0xd   :  { %32 = dma.hbm_to_vmem [thread:$0]  %s1210_s1, 12288, %s27_s13, [#allocation6], %s1060_s15, %s1060_s15, %s1061_s16  }
   0xe   :  { %s1062_s19 = smov [#allocation2]   ;;  %s1063_s21 = smov [#allocation7]  }
   0xf   :  { %s17_s20 = sshll.u32 %s1062_s19, 4  ;;  %s38_s22 = sshll.u32 %s1063_s21, 4  ;;  %s18_s20 = int_to_ptr.vmem [resolvable:$true] %s17_s20  ;;  %s39_s22 = int_to_ptr.vmem [resolvable:$true] %s38_s22 }
  0x10   :  { %s1001_s23 = scalar_lea.vmem %s18_s20, 128  ;;  %p1006_p6 = scmp.lt.s32.totalorder %s18_s20, %s18_s20 }
  0x11   :  { %p1002_p5 = scmp.ne.s32.totalorder %s18_s20, %s1001_s23  ;;  %p1007_p7 = scmp.lt.s32.totalorder %s1001_s23, %s1001_s23 }
  0x13   :  { %p1008_p8 = por %p1007_p7, %p1006_p6 }
  0x15   :  { %p1009_p9 = pnand %p1008_p8, %p1002_p5 }
  0x17   :  { %1012 = shalt.err (!%p1009_p9)
}
  0x18   :  { %20 = dma.hbm_to_vmem [thread:$0]  %s1209_s0, 128, %s18_s20, [#allocation3]  }
  0x19   :  { %s1021_s26 = scalar_lea.vmem %s39_s22, 96  ;;  %p1026_p11 = scmp.lt.s32.totalorder %s39_s22, %s39_s22 }
  0x1a   :  { %p1022_p10 = scmp.ne.s32.totalorder %s39_s22, %s1021_s26  ;;  %p1027_p12 = scmp.lt.s32.totalorder %s1021_s26, %s1021_s26 }
  0x1c   :  { %p1028_p13 = por %p1027_p12, %p1026_p11 }
  0x1e   :  { %p1029_p0 = pnand %p1028_p13, %p1022_p10 }
  0x20   :  { %1032 = shalt.err (!%p1029_p0)
}
  0x21   :  { %s1064_s1 = smov 16   ;;  %s1065_s27 = smov 1  }
  0x22   :  { %44 = dma.hbm_to_vmem [thread:$0]  %s1211_s2, 96, %s39_s22, [#allocation6], %s1064_s1, %s1064_s1, %s1065_s27  }
  0x23   :  { %1053 = dma.done.wait [#allocation3], 128  }
  0x24   :  { %1054 = vsyncadd [#allocation3], 4294967168 }
  0x25   :  { %1055 = dma.done.wait [#allocation6], 12384  }
  0x26   :  { %1056 = vsyncadd [#allocation6], 4294954912  ;;  %v1066_v0 = vmov 0.0   ;;  %vm1067_vm0 = vmmov 0   ;;  %v70_v1 = vld [vmem:[#allocation5 + $0x78] sm:$0xff]  ;;  %v69_v2 = vld [vmem:[#allocation5 + $0x70] sm:$0xff] }
  0x27   :  { %753 = vmatprep.subr.mxu0 %v1066_v0  ;;  %785 = vmatprep.mubr.msk.f32.mxu0 %vm1067_vm0, %v1066_v0  ;;  %v68_v3 = vld [vmem:[#allocation5 + $0x68] sm:$0xff]  ;;  %v67_v4 = vld [vmem:[#allocation5 + $0x60] sm:$0xff]  ;;  %v165_v5 = vld [vmem:[#allocation5 + $0xf8] sm:$0xff]  ;;  %s1068_s0 = smov [#allocation8]  }
  0x28   :  { %788 = vmatprep.subr.mxu1 %v1066_v0  ;;  %820 = vmatprep.mubr.msk.f32.mxu1 %vm1067_vm0, %v1066_v0  ;;  %v66_v6 = vld [vmem:[#allocation5 + $0x58] sm:$0xff]  ;;  %v164_v7 = vld [vmem:[#allocation5 + $0xf0] sm:$0xff]  ;;  %v163_v8 = vld [vmem:[#allocation5 + $0xe8] sm:$0xff]  ;;  %s635_s2 = sshll.u32 %s1068_s0, 4  ;;  %s636_s2 = int_to_ptr.vmem [resolvable:$true] %s635_s2 }
  0x29   :  { %754 = vmatpush3.msra.mxu0 %v70_v1  ;;  %789 = vmatpush3.msra.mxu1 %v165_v5  ;;  %v65_v9 = vld [vmem:[#allocation5 + $0x50] sm:$0xff]  ;;  %v162_v10 = vld [vmem:[#allocation5 + $0xe0] sm:$0xff]  ;;  %v64_v11 = vld [vmem:[#allocation5 + $0x48] sm:$0xff]  ;;  %s1033_s30 = scalar_lea.vmem %s636_s2, 128  ;;  %p1038_p2 = scmp.lt.s32.totalorder %s636_s2, %s636_s2 }
  0x2a   :  { %755 = vmatprep.subr.mxu0 %v1066_v0  ;;  %790 = vmatprep.subr.mxu1 %v1066_v0  ;;  %v161_v12 = vld [vmem:[#allocation5 + $0xd8] sm:$0xff]  ;;  %v63_v13 = vld [vmem:[#allocation5 + $0x40] sm:$0xff]  ;;  %v160_v14 = vld [vmem:[#allocation5 + $0xd0] sm:$0xff]  ;;  %p1034_p1 = scmp.ne.s32.totalorder %s636_s2, %s1033_s30  ;;  %p1039_p3 = scmp.lt.s32.totalorder %s1033_s30, %s1033_s30 }
  0x2b   :  { %756 = vmatpush3.msra.mxu0 %v69_v2  ;;  %791 = vmatpush3.msra.mxu1 %v164_v7  ;;  %v62_v15 = vld [vmem:[#allocation5 + $0x38] sm:$0xff]  ;;  %v159_v16 = vld [vmem:[#allocation5 + $0xc8] sm:$0xff]  ;;  %v61_v17 = vld [vmem:[#allocation5 + $0x30] sm:$0xff] }
  0x2c   :  { %757 = vmatprep.subr.mxu0 %v1066_v0  ;;  %792 = vmatprep.subr.mxu1 %v1066_v0  ;;  %v158_v18 = vld [vmem:[#allocation5 + $0xc0] sm:$0xff]  ;;  %v60_v19 = vld [vmem:[#allocation5 + $0x28] sm:$0xff]  ;;  %v157_v20 = vld [vmem:[#allocation5 + $0xb8] sm:$0xff]  ;;  %p1040_p4 = por %p1039_p3, %p1038_p2 }
  0x2d   :  { %758 = vmatpush3.msra.mxu0 %v68_v3  ;;  %793 = vmatpush3.msra.mxu1 %v163_v8  ;;  %v59_v21 = vld [vmem:[#allocation5 + $0x20] sm:$0xff]  ;;  %v156_v22 = vld [vmem:[#allocation5 + $0xb0] sm:$0xff]  ;;  %v58_v23 = vld [vmem:[#allocation5 + $0x18] sm:$0xff] }
  0x2e   :  { %759 = vmatprep.subr.mxu0 %v1066_v0  ;;  %794 = vmatprep.subr.mxu1 %v1066_v0  ;;  %v155_v24 = vld [vmem:[#allocation5 + $0xa8] sm:$0xff]  ;;  %v57_v25 = vld [vmem:[#allocation5 + $0x10] sm:$0xff]  ;;  %v154_v26 = vld [vmem:[#allocation5 + $0xa0] sm:$0xff]  ;;  %p1041_p5 = pnand %p1040_p4, %p1034_p1 }
  0x2f   :  { %760 = vmatpush3.msra.mxu0 %v67_v4  ;;  %795 = vmatpush3.msra.mxu1 %v162_v10  ;;  %v56_v27 = vld [vmem:[#allocation5 + $0x8] sm:$0xff]  ;;  %v153_v28 = vld [vmem:[#allocation5 + $0x98] sm:$0xff]  ;;  %v55_v29 = vld [vmem:[#allocation5] sm:$0xff] }
  0x30   :  { %761 = vmatprep.subr.mxu0 %v1066_v0  ;;  %796 = vmatprep.subr.mxu1 %v1066_v0  ;;  %v54_v30 = vld [vmem:[#allocation2] sm:$0xff]  ;;  %v152_v31 = vld [vmem:[#allocation5 + $0x90] sm:$0xff]  ;;  %v151_v32 = vld [vmem:[#allocation5 + $0x88] sm:$0xff] }
  0x31   :  { %762 = vmatpush3.msra.mxu0 %v66_v6  ;;  %797 = vmatpush3.msra.mxu1 %v161_v12  ;;  %v150_v33 = vld [vmem:[#allocation5 + $0x80] sm:$0xff]  ;;  %v261_v34 = vld [vmem:[#allocation5 + $0x178] sm:$0xff]  ;;  %v260_v35 = vld [vmem:[#allocation5 + $0x170] sm:$0xff] }
  0x32   :  { %763 = vmatprep.subr.mxu0 %v1066_v0  ;;  %798 = vmatprep.subr.mxu1 %v1066_v0  ;;  %v259_v36 = vld [vmem:[#allocation5 + $0x168] sm:$0xff]  ;;  %v258_v37 = vld [vmem:[#allocation5 + $0x160] sm:$0xff]  ;;  %v257_v38 = vld [vmem:[#allocation5 + $0x158] sm:$0xff] }
  0x33   :  { %764 = vmatpush3.msra.mxu0 %v65_v9  ;;  %799 = vmatpush3.msra.mxu1 %v160_v14  ;;  %v256_v39 = vld [vmem:[#allocation5 + $0x150] sm:$0xff]  ;;  %v255_v40 = vld [vmem:[#allocation5 + $0x148] sm:$0xff]  ;;  %v254_v41 = vld [vmem:[#allocation5 + $0x140] sm:$0xff] }
  0x34   :  { %765 = vmatprep.subr.mxu0 %v1066_v0  ;;  %800 = vmatprep.subr.mxu1 %v1066_v0  ;;  %v253_v42 = vld [vmem:[#allocation5 + $0x138] sm:$0xff]  ;;  %v252_v43 = vld [vmem:[#allocation5 + $0x130] sm:$0xff]  ;;  %v251_v44 = vld [vmem:[#allocation5 + $0x128] sm:$0xff] }
  0x35   :  { %766 = vmatpush3.msra.mxu0 %v64_v11  ;;  %801 = vmatpush3.msra.mxu1 %v159_v16  ;;  %v250_v45 = vld [vmem:[#allocation5 + $0x120] sm:$0xff]  ;;  %v249_v46 = vld [vmem:[#allocation5 + $0x118] sm:$0xff]  ;;  %v248_v52 = vld [vmem:[#allocation5 + $0x110] sm:$0xff] }
  0x36   :  { %767 = vmatprep.subr.mxu0 %v1066_v0  ;;  %802 = vmatprep.subr.mxu1 %v1066_v0  ;;  %v645_v47 = vld [vmem:[#allocation7] ss:$0 sm:$0xff]  ;;  %v247_v53 = vld [vmem:[#allocation5 + $0x108] sm:$0xff]  ;;  %v357_v55 = vld [vmem:[#allocation5 + $0x1f8] sm:$0xff] }
  0x37   :  { %768 = vmatpush3.msra.mxu0 %v63_v13  ;;  %803 = vmatpush3.msra.mxu1 %v158_v18  ;;  %v246_v54 = vld [vmem:[#allocation5 + $0x100] sm:$0xff]  ;;  %v356_v56 = vld [vmem:[#allocation5 + $0x1f0] sm:$0xff]  ;;  %v355_v57 = vld [vmem:[#allocation5 + $0x1e8] sm:$0xff] }
  0x38   :  { %769 = vmatprep.subr.mxu0 %v1066_v0  ;;  %804 = vmatprep.subr.mxu1 %v1066_v0  ;;  %v354_v58 = vld [vmem:[#allocation5 + $0x1e0] sm:$0xff]  ;;  %v353_v59 = vld [vmem:[#allocation5 + $0x1d8] sm:$0xff]  ;;  %v352_v60 = vld [vmem:[#allocation5 + $0x1d0] sm:$0xff] }
  0x39   :  { %770 = vmatpush3.msra.mxu0 %v62_v15  ;;  %805 = vmatpush3.msra.mxu1 %v157_v20  ;;  %v351_v61 = vld [vmem:[#allocation5 + $0x1c8] sm:$0xff]  ;;  %v350_v62 = vld [vmem:[#allocation5 + $0x1c0] sm:$0xff]  ;;  %v349_v63 = vld [vmem:[#allocation5 + $0x1b8] sm:$0xff] }
  0x3a   :  { %771 = vmatprep.subr.mxu0 %v1066_v0  ;;  %806 = vmatprep.subr.mxu1 %v1066_v0  ;;  %v348_v1 = vld [vmem:[#allocation5 + $0x1b0] sm:$0xff]  ;;  %v347_v2 = vld [vmem:[#allocation5 + $0x1a8] sm:$0xff]  ;;  %v346_v3 = vld [vmem:[#allocation5 + $0x1a0] sm:$0xff] }
  0x3b   :  { %772 = vmatpush3.msra.mxu0 %v61_v17  ;;  %807 = vmatpush3.msra.mxu1 %v156_v22  ;;  %v345_v4 = vld [vmem:[#allocation5 + $0x198] sm:$0xff]  ;;  %v646_v5 = vld [vmem:[#allocation7 + $0x1] ss:$0 sm:$0xff]  ;;  %v344_v10 = vld [vmem:[#allocation5 + $0x190] sm:$0xff] }
  0x3c   :  { %773 = vmatprep.subr.mxu0 %v1066_v0  ;;  %808 = vmatprep.subr.mxu1 %v1066_v0  ;;  %v343_v11 = vld [vmem:[#allocation5 + $0x188] sm:$0xff]  ;;  %v342_v12 = vld [vmem:[#allocation5 + $0x180] sm:$0xff]  ;;  %v453_v13 = vld [vmem:[#allocation5 + $0x278] sm:$0xff] }
  0x3d   :  { %774 = vmatpush3.msra.mxu0 %v60_v19  ;;  %809 = vmatpush3.msra.mxu1 %v155_v24  ;;  %v452_v14 = vld [vmem:[#allocation5 + $0x270] sm:$0xff]  ;;  %v451_v15 = vld [vmem:[#allocation5 + $0x268] sm:$0xff]  ;;  %v450_v16 = vld [vmem:[#allocation5 + $0x260] sm:$0xff] }
  0x3e   :  { %775 = vmatprep.subr.mxu0 %v1066_v0  ;;  %810 = vmatprep.subr.mxu1 %v1066_v0  ;;  %v449_v17 = vld [vmem:[#allocation5 + $0x258] sm:$0xff]  ;;  %v448_v18 = vld [vmem:[#allocation5 + $0x250] sm:$0xff]  ;;  %v447_v19 = vld [vmem:[#allocation5 + $0x248] sm:$0xff] }
  0x3f   :  { %776 = vmatpush3.msra.mxu0 %v59_v21  ;;  %811 = vmatpush3.msra.mxu1 %v154_v26  ;;  %v446_v20 = vld [vmem:[#allocation5 + $0x240] sm:$0xff]  ;;  %v445_v21 = vld [vmem:[#allocation5 + $0x238] sm:$0xff]  ;;  %v444_v22 = vld [vmem:[#allocation5 + $0x230] sm:$0xff] }
  0x40   :  { %777 = vmatprep.subr.mxu0 %v1066_v0  ;;  %812 = vmatprep.subr.mxu1 %v1066_v0  ;;  %v442_v24 = vld [vmem:[#allocation5 + $0x220] sm:$0xff] }
  0x41   :  { %778 = vmatpush3.msra.mxu0 %v58_v23  ;;  %813 = vmatpush3.msra.mxu1 %v153_v28  ;;  %v443_v23 = vld [vmem:[#allocation5 + $0x228] sm:$0xff]  ;;  %v647_v26 = vld [vmem:[#allocation7 + $0x2] ss:$0 sm:$0xff] }
  0x42   :  { %779 = vmatprep.subr.mxu0 %v1066_v0  ;;  %814 = vmatprep.subr.mxu1 %v1066_v0 }
  0x43   :  { %780 = vmatpush3.msra.mxu0 %v57_v25  ;;  %815 = vmatpush3.msra.mxu1 %v152_v31  ;;  %v441_v25 = vld [vmem:[#allocation5 + $0x218] sm:$0xff]  ;;  %v440_v31 = vld [vmem:[#allocation5 + $0x210] sm:$0xff] }
  0x44   :  { %781 = vmatprep.subr.mxu0 %v1066_v0  ;;  %816 = vmatprep.subr.mxu1 %v1066_v0 }
  0x45   :  { %782 = vmatpush3.msra.mxu0 %v56_v27  ;;  %817 = vmatpush3.msra.mxu1 %v151_v32  ;;  %v439_v32 = vld [vmem:[#allocation5 + $0x208] sm:$0xff] }
  0x46   :  { %783 = vmatprep.subr.mxu0 %v1066_v0  ;;  %818 = vmatprep.subr.mxu1 %v1066_v0 }
  0x47   :  { %784 = vmatpush3.msra.mxu0 %v55_v29  ;;  %819 = vmatpush3.msra.mxu1 %v150_v33  ;;  %v438_v33 = vld [vmem:[#allocation5 + $0x200] sm:$0xff] }
  0x48   :  { %786 = vmatmul.mubr.f32.vlgmr.msra.gmra.mxu0 %v54_v30  ;;  %823 = vmatprep.subr.mxu0 %v1066_v0 }
  0x49   :  { %855 = vmatprep.mubr.msk.f32.mxu0 %vm1067_vm0, %v1066_v0  ;;  %858 = vmatprep.subr.mxu1 %v1066_v0 }
  0x4a   :  { %824 = vmatpush3.msra.mxu0 %v261_v34  ;;  %v549_v34 = vld [vmem:[#allocation5 + $0x2f8] sm:$0xff] }
  0x4b   :  { %825 = vmatprep.subr.mxu0 %v1066_v0 }
  0x4c   :  { %826 = vmatpush3.msra.mxu0 %v260_v35  ;;  %v548_v35 = vld [vmem:[#allocation5 + $0x2f0] sm:$0xff] }
  0x4d   :  { %827 = vmatprep.subr.mxu0 %v1066_v0 }
  0x4e   :  { %828 = vmatpush3.msra.mxu0 %v259_v36  ;;  %v547_v36 = vld [vmem:[#allocation5 + $0x2e8] sm:$0xff] }
  0x4f   :  { %829 = vmatprep.subr.mxu0 %v1066_v0 }
  0x50   :  { %830 = vmatpush3.msra.mxu0 %v258_v37  ;;  %v546_v37 = vld [vmem:[#allocation5 + $0x2e0] sm:$0xff] }
  0x51   :  { %831 = vmatprep.subr.mxu0 %v1066_v0 }
  0x52   :  { %832 = vmatpush3.msra.mxu0 %v257_v38  ;;  %v545_v38 = vld [vmem:[#allocation5 + $0x2d8] sm:$0xff] }
  0x53   :  { %833 = vmatprep.subr.mxu0 %v1066_v0 }
  0x54   :  { %834 = vmatpush3.msra.mxu0 %v256_v39  ;;  %v544_v39 = vld [vmem:[#allocation5 + $0x2d0] sm:$0xff] }
  0x55   :  { %835 = vmatprep.subr.mxu0 %v1066_v0 }
  0x56   :  { %836 = vmatpush3.msra.mxu0 %v255_v40  ;;  %v543_v40 = vld [vmem:[#allocation5 + $0x2c8] sm:$0xff] }
  0x57   :  { %837 = vmatprep.subr.mxu0 %v1066_v0 }
  0x58   :  { %838 = vmatpush3.msra.mxu0 %v254_v41  ;;  %v542_v41 = vld [vmem:[#allocation5 + $0x2c0] sm:$0xff] }
  0x59   :  { %839 = vmatprep.subr.mxu0 %v1066_v0 }
  0x5a   :  { %840 = vmatpush3.msra.mxu0 %v253_v42  ;;  %v541_v42 = vld [vmem:[#allocation5 + $0x2b8] sm:$0xff] }
  0x5b   :  { %841 = vmatprep.subr.mxu0 %v1066_v0 }
  0x5c   :  { %842 = vmatpush3.msra.mxu0 %v252_v43  ;;  %v540_v43 = vld [vmem:[#allocation5 + $0x2b0] sm:$0xff] }
  0x5d   :  { %843 = vmatprep.subr.mxu0 %v1066_v0 }
  0x5e   :  { %844 = vmatpush3.msra.mxu0 %v251_v44  ;;  %v539_v44 = vld [vmem:[#allocation5 + $0x2a8] sm:$0xff] }
  0x5f   :  { %845 = vmatprep.subr.mxu0 %v1066_v0 }
  0x60   :  { %846 = vmatpush3.msra.mxu0 %v250_v45  ;;  %v538_v45 = vld [vmem:[#allocation5 + $0x2a0] sm:$0xff] }
  0x61   :  { %847 = vmatprep.subr.mxu0 %v1066_v0 }
  0x62   :  { %848 = vmatpush3.msra.mxu0 %v249_v46  ;;  %v537_v46 = vld [vmem:[#allocation5 + $0x298] sm:$0xff] }
  0x63   :  { %849 = vmatprep.subr.mxu0 %v1066_v0 }
  0x64   :  { %850 = vmatpush3.msra.mxu0 %v248_v52  ;;  %v536_v52 = vld [vmem:[#allocation5 + $0x290] sm:$0xff] }
  0x65   :  { %851 = vmatprep.subr.mxu0 %v1066_v0 }
  0x66   :  { %852 = vmatpush3.msra.mxu0 %v247_v53  ;;  %v535_v53 = vld [vmem:[#allocation5 + $0x288] sm:$0xff] }
  0x67   :  { %853 = vmatprep.subr.mxu0 %v1066_v0 }
  0x68   :  { %854 = vmatpush3.msra.mxu0 %v246_v54  ;;  %v534_v54 = vld [vmem:[#allocation5 + $0x280] sm:$0xff] }
  0x69   :  { %893 = vmatprep.subr.mxu0 %v1066_v0 }
 0x108   :  { %v144_v48 = vpop.f32.mrf.mxu0 }
 0x109   :  { %v145_v49 = vadd.f32 %v645_v47, %v144_v48  ;;  %v648_v47 = vld [vmem:[#allocation7 + $0x3] ss:$0 sm:$0xff] }
 0x10a   :  { %v787_v50 = vpop.f32.mrf.mxu0 }
 0x10b   :  { %v148_v51 = vmax.f32 %v145_v49, 0.0 }
 0x10d   :  { %821 = vmatmul.mubr.f32.vlgmr.msra.gmra.mxu1 %v148_v51 }
 0x10e   :  { %890 = vmatprep.mubr.msk.f32.mxu1 %vm1067_vm0, %v1066_v0  ;;  %859 = vmatpush3.msra.mxu1 %v357_v55  ;;  %v649_v55 = vld [vmem:[#allocation7 + $0x4] ss:$0 sm:$0xff] }
 0x10f   :  { %860 = vmatprep.subr.mxu1 %v1066_v0 }
 0x110   :  { %861 = vmatpush3.msra.mxu1 %v356_v56 }
 0x111   :  { %862 = vmatprep.subr.mxu1 %v1066_v0 }
 0x112   :  { %863 = vmatpush3.msra.mxu1 %v355_v57 }
 0x113   :  { %864 = vmatprep.subr.mxu1 %v1066_v0 }
 0x114   :  { %865 = vmatpush3.msra.mxu1 %v354_v58 }
 0x115   :  { %866 = vmatprep.subr.mxu1 %v1066_v0 }
 0x116   :  { %867 = vmatpush3.msra.mxu1 %v353_v59 }
 0x117   :  { %868 = vmatprep.subr.mxu1 %v1066_v0 }
 0x118   :  { %869 = vmatpush3.msra.mxu1 %v352_v60  ;;  %v650_v60 = vld [vmem:[#allocation7 + $0x5] ss:$0 sm:$0xff] }
 0x119   :  { %870 = vmatprep.subr.mxu1 %v1066_v0 }
 0x11a   :  { %871 = vmatpush3.msra.mxu1 %v351_v61 }
 0x11b   :  { %872 = vmatprep.subr.mxu1 %v1066_v0 }
 0x11c   :  { %873 = vmatpush3.msra.mxu1 %v350_v62 }
 0x11d   :  { %874 = vmatprep.subr.mxu1 %v1066_v0 }
 0x11e   :  { %875 = vmatpush3.msra.mxu1 %v349_v63 }
 0x11f   :  { %876 = vmatprep.subr.mxu1 %v1066_v0 }
 0x120   :  { %877 = vmatpush3.msra.mxu1 %v348_v1 }
 0x121   :  { %878 = vmatprep.subr.mxu1 %v1066_v0 }
 0x122   :  { %879 = vmatpush3.msra.mxu1 %v347_v2 }
 0x123   :  { %880 = vmatprep.subr.mxu1 %v1066_v0 }
 0x124   :  { %881 = vmatpush3.msra.mxu1 %v346_v3 }
 0x125   :  { %882 = vmatprep.subr.mxu1 %v1066_v0 }
 0x126   :  { %883 = vmatpush3.msra.mxu1 %v345_v4 }
 0x127   :  { %884 = vmatprep.subr.mxu1 %v1066_v0 }
 0x128   :  { %885 = vmatpush3.msra.mxu1 %v344_v10 }
 0x129   :  { %886 = vmatprep.subr.mxu1 %v1066_v0 }
 0x12a   :  { %887 = vmatpush3.msra.mxu1 %v343_v11 }
 0x12b   :  { %888 = vmatprep.subr.mxu1 %v1066_v0 }
 0x12c   :  { %889 = vmatpush3.msra.mxu1 %v342_v12 }
 0x12d   :  { %928 = vmatprep.subr.mxu1 %v1066_v0 }
 0x1cd   :  { %v240_v6 = vpop.f32.mrf.mxu1 }
 0x1ce   :  { %v241_v7 = vadd.f32 %v646_v5, %v240_v6 }
 0x1cf   :  { %v822_v8 = vpop.f32.mrf.mxu1 }
 0x1d0   :  { %v244_v9 = vmax.f32 %v241_v7, 0.0 }
 0x1d2   :  { %856 = vmatmul.mubr.f32.vlgmr.msra.gmra.mxu0 %v244_v9 }
 0x1d3   :  { %925 = vmatprep.mubr.msk.f32.mxu0 %vm1067_vm0, %v1066_v0  ;;  %894 = vmatpush3.msra.mxu0 %v453_v13 }
 0x1d4   :  { %895 = vmatprep.subr.mxu0 %v1066_v0 }
 0x1d5   :  { %896 = vmatpush3.msra.mxu0 %v452_v14 }
 0x1d6   :  { %897 = vmatprep.subr.mxu0 %v1066_v0 }
 0x1d7   :  { %898 = vmatpush3.msra.mxu0 %v451_v15 }
 0x1d8   :  { %899 = vmatprep.subr.mxu0 %v1066_v0 }
 0x1d9   :  { %900 = vmatpush3.msra.mxu0 %v450_v16 }
 0x1da   :  { %901 = vmatprep.subr.mxu0 %v1066_v0 }
 0x1db   :  { %902 = vmatpush3.msra.mxu0 %v449_v17 }
 0x1dc   :  { %903 = vmatprep.subr.mxu0 %v1066_v0 }
 0x1dd   :  { %904 = vmatpush3.msra.mxu0 %v448_v18 }
 0x1de   :  { %905 = vmatprep.subr.mxu0 %v1066_v0 }
 0x1df   :  { %906 = vmatpush3.msra.mxu0 %v447_v19 }
 0x1e0   :  { %907 = vmatprep.subr.mxu0 %v1066_v0 }
 0x1e1   :  { %908 = vmatpush3.msra.mxu0 %v446_v20 }
 0x1e2   :  { %909 = vmatprep.subr.mxu0 %v1066_v0 }
 0x1e3   :  { %910 = vmatpush3.msra.mxu0 %v445_v21 }
 0x1e4   :  { %911 = vmatprep.subr.mxu0 %v1066_v0 }
 0x1e5   :  { %912 = vmatpush3.msra.mxu0 %v444_v22 }
 0x1e6   :  { %913 = vmatprep.subr.mxu0 %v1066_v0 }
 0x1e7   :  { %914 = vmatpush3.msra.mxu0 %v443_v23 }
 0x1e8   :  { %915 = vmatprep.subr.mxu0 %v1066_v0 }
 0x1e9   :  { %916 = vmatpush3.msra.mxu0 %v442_v24 }
 0x1ea   :  { %917 = vmatprep.subr.mxu0 %v1066_v0 }
 0x1eb   :  { %918 = vmatpush3.msra.mxu0 %v441_v25 }
 0x1ec   :  { %919 = vmatprep.subr.mxu0 %v1066_v0 }
 0x1ed   :  { %920 = vmatpush3.msra.mxu0 %v440_v31 }
 0x1ee   :  { %921 = vmatprep.subr.mxu0 %v1066_v0 }
 0x1ef   :  { %922 = vmatpush3.msra.mxu0 %v439_v32 }
 0x1f0   :  { %923 = vmatprep.subr.mxu0 %v1066_v0 }
 0x1f1   :  { %924 = vmatpush3.msra.mxu0 %v438_v33 }
 0x292   :  { %v336_v27 = vpop.f32.mrf.mxu0 }
 0x293   :  { %v337_v28 = vadd.f32 %v647_v26, %v336_v27 }
 0x294   :  { %v857_v29 = vpop.f32.mrf.mxu0 }
 0x295   :  { %v340_v30 = vmax.f32 %v337_v28, 0.0 }
 0x297   :  { %891 = vmatmul.mubr.f32.vlgmr.msra.gmra.mxu1 %v340_v30 }
 0x298   :  { %960 = vmatprep.mubr.msk.f32.mxu1 %vm1067_vm0, %v1066_v0  ;;  %929 = vmatpush3.msra.mxu1 %v549_v34 }
 0x299   :  { %930 = vmatprep.subr.mxu1 %v1066_v0 }
 0x29a   :  { %931 = vmatpush3.msra.mxu1 %v548_v35 }
 0x29b   :  { %932 = vmatprep.subr.mxu1 %v1066_v0 }
 0x29c   :  { %933 = vmatpush3.msra.mxu1 %v547_v36 }
 0x29d   :  { %934 = vmatprep.subr.mxu1 %v1066_v0 }
 0x29e   :  { %935 = vmatpush3.msra.mxu1 %v546_v37 }
 0x29f   :  { %936 = vmatprep.subr.mxu1 %v1066_v0 }
 0x2a0   :  { %937 = vmatpush3.msra.mxu1 %v545_v38 }
 0x2a1   :  { %938 = vmatprep.subr.mxu1 %v1066_v0 }
 0x2a2   :  { %939 = vmatpush3.msra.mxu1 %v544_v39 }
 0x2a3   :  { %940 = vmatprep.subr.mxu1 %v1066_v0 }
 0x2a4   :  { %941 = vmatpush3.msra.mxu1 %v543_v40 }
 0x2a5   :  { %942 = vmatprep.subr.mxu1 %v1066_v0 }
 0x2a6   :  { %943 = vmatpush3.msra.mxu1 %v542_v41 }
 0x2a7   :  { %944 = vmatprep.subr.mxu1 %v1066_v0 }
 0x2a8   :  { %945 = vmatpush3.msra.mxu1 %v541_v42 }
 0x2a9   :  { %946 = vmatprep.subr.mxu1 %v1066_v0 }
 0x2aa   :  { %947 = vmatpush3.msra.mxu1 %v540_v43 }
 0x2ab   :  { %948 = vmatprep.subr.mxu1 %v1066_v0 }
 0x2ac   :  { %949 = vmatpush3.msra.mxu1 %v539_v44 }
 0x2ad   :  { %950 = vmatprep.subr.mxu1 %v1066_v0 }
 0x2ae   :  { %951 = vmatpush3.msra.mxu1 %v538_v45 }
 0x2af   :  { %952 = vmatprep.subr.mxu1 %v1066_v0 }
 0x2b0   :  { %953 = vmatpush3.msra.mxu1 %v537_v46 }
 0x2b1   :  { %954 = vmatprep.subr.mxu1 %v1066_v0 }
 0x2b2   :  { %955 = vmatpush3.msra.mxu1 %v536_v52 }
 0x2b3   :  { %956 = vmatprep.subr.mxu1 %v1066_v0 }
 0x2b4   :  { %957 = vmatpush3.msra.mxu1 %v535_v53 }
 0x2b5   :  { %958 = vmatprep.subr.mxu1 %v1066_v0 }
 0x2b6   :  { %959 = vmatpush3.msra.mxu1 %v534_v54 }
 0x357   :  { %v432_v48 = vpop.f32.mrf.mxu1 }
 0x358   :  { %v433_v49 = vadd.f32 %v648_v47, %v432_v48 }
 0x359   :  { %v892_v50 = vpop.f32.mrf.mxu1 }
 0x35a   :  { %v436_v51 = vmax.f32 %v433_v49, 0.0 }
 0x35c   :  { %926 = vmatmul.mubr.f32.vlgmr.msra.gmra.mxu0 %v436_v51 }
 0x41c   :  { %v528_v56 = vpop.f32.mrf.mxu0 }
 0x41d   :  { %v529_v57 = vadd.f32 %v649_v55, %v528_v56 }
 0x41e   :  { %v927_v58 = vpop.f32.mrf.mxu0 }
 0x41f   :  { %v532_v59 = vmax.f32 %v529_v57, 0.0 }
 0x421   :  { %961 = vmatmul.mubr.f32.vlgmr.msra.gmra.mxu1 %v532_v59 }
 0x4e1   :  { %v624_v61 = vpop.f32.mrf.mxu1 }
 0x4e2   :  { %v625_v62 = vadd.f32 %v650_v60, %v624_v61 }
 0x4e3   :  { %v962_v63 = vpop.f32.mrf.mxu1 }
 0x4e4   :  { %628 = vst [vmem:[#allocation8] sm:$0xff] %v625_v62 }
 0x4e5   :  { %1044 = shalt.err (!%p1041_p5)
}
 0x4e6   :  { %638 = dma.vmem_to_hbm [thread:$0]  %s636_s2, 128, %s1212_s3, [#allocation4]  }
 0x4e7   :  { %1057 = dma.done.wait [#allocation4], 128  }
 0x4e8   :  { %1058 = vsyncadd [#allocation4], 4294967168 }
 0x4e9   :  { %642 = vsyncpa [#allocation3], 1 }
 0x4ea   :  { %643 = vsyncpa [#allocation6], 1 }
 0x4eb   :  { %644 = vsyncpa [#allocation4], 1 }

</bundles_post_ra>
